<compile_context>
chip_gen: v7x
topology: tpu7x:2x2x1
jax: 0.10.0
libtpu: 0.0.40
codegen_flags: <defaults>
</compile_context>

<pallas_src>
import functools

import jax
import jax.numpy as jnp
import numpy as np
from jax.experimental import pallas as pl
from jax.experimental.pallas import tpu as pltpu

HIDDEN = 32


def _disc_head_kernel(stage_ref, x_ref, w1_ref, b1_ref, w2_ref, b2_ref, o_ref):
    # Selected-stage weights arrive already DMA'd (scalar-prefetch-driven
    # index_maps), so the body sees clean 2-D refs.
    w1 = w1_ref[...]                    # (D, 32)   torch W1.T
    b1 = b1_ref[...]                    # (1, 32)
    w2 = w2_ref[...]                    # (1, 32)   torch W2 row
    b2 = b2_ref[stage_ref[0]]           # scalar, SMEM

    # Hidden layer on the MXU, f32 accumulation; sigmoid/bias on VPU+EUP in f32.
    h = jnp.dot(x_ref[...], w1, preferred_element_type=jnp.float32)
    h = jax.nn.sigmoid(h + b1)
    # 32 -> 1 output layer: VPU multiply + XLU lane reduction (no N=1 MXU matmul).
    o = jnp.sum(h * w2, axis=-1) + b2   # (TM,)
    # Lane-dense store: one (1, TM) lane-major row per batch tile.
    o_ref[0, :] = o.astype(o_ref.dtype)


@functools.partial(jax.jit, static_argnames=("matmul_dtype",))
def discriminator_forward(next_s, params, stage_idx, matmul_dtype=jnp.float32):
    """Pallas equivalent of Discriminator.forward(next_s, stage_idx).

    params = (w1s, b1s, w2s, b2s):
        w1s: [n_stages, D, 32]   per-stage torch W1.T
        b1s: [n_stages, 1, 32]
        w2s: [n_stages, 1, 32]   per-stage torch W2 row
        b2s: [n_stages]
    stage_idx: int / int32 scalar (dynamic -> same executable for all stages).
    Returns logits of shape (B, 1).
    """
    w1s, b1s, w2s, b2s = params
    n_stages, D, H = w1s.shape
    B = next_s.shape[0]

    # Clamp the dynamic stage index (DMA/VMEM reads are not bounds-checked).
    stage = jnp.clip(jnp.asarray(stage_idx, jnp.int32), 0, n_stages - 1)
    stage = stage.reshape((1,))

    # Batch tiling: one tile for small B, 512-row tiles for large B.
    if B <= 512:
        TM = max(8, ((B + 7) // 8) * 8)
    else:
        TM = 512
    B_pad = ((B + TM - 1) // TM) * TM
    num_tiles = B_pad // TM

    x = next_s
    if x.dtype != matmul_dtype:
        # bf16 MXU inputs (v6e/v7x); elementwise work stays f32 in the kernel.
        x = x.astype(matmul_dtype)
        w1s = w1s.astype(matmul_dtype)
    if B_pad != B:
        x = jnp.pad(x, ((0, B_pad - B), (0, 0)))

    # Explicit VMEM budget (double-buffered x/out tiles + one stage's weights),
    # with headroom; stays small on v5e's 16 MiB / v7x's 32 MiB scoped defaults.
    itemsize = jnp.dtype(matmul_dtype).itemsize
    vmem_limit = 4 * (2 * TM * D * itemsize // 4 + 2 * TM + D * H + 4 * H) * 4
    vmem_limit = int(min(64 * 1024 * 1024, max(4 * 1024 * 1024, vmem_limit)))

    out = pl.pallas_call(
        _disc_head_kernel,
        out_shape=jax.ShapeDtypeStruct((1, B_pad), jnp.float32),
        grid_spec=pltpu.PrefetchScalarGridSpec(
            num_scalar_prefetch=1,
            grid=(num_tiles,),
            in_specs=[
                # Batch tile of next_s.
                pl.BlockSpec((TM, D), lambda i, stage: (i, 0)),
                # Selected stage's weights; constant block index across the
                # batch grid -> DMA'd once, VMEM-resident for all tiles.
                pl.BlockSpec((pl.Squeezed(), D, H),
                             lambda i, stage: (stage[0], 0, 0)),
                pl.BlockSpec((pl.Squeezed(), 1, H),
                             lambda i, stage: (stage[0], 0, 0)),
                pl.BlockSpec((pl.Squeezed(), 1, H),
                             lambda i, stage: (stage[0], 0, 0)),
                # All stages' output biases (tiny) live in SMEM.
                pl.BlockSpec(memory_space=pltpu.MemorySpace.SMEM),
            ],
            out_specs=pl.BlockSpec((1, TM), lambda i, stage: (0, i)),
        ),
        compiler_params=pltpu.CompilerParams(
            dimension_semantics=("parallel",),   # batch tiles shard across TCs
            vmem_limit_bytes=vmem_limit,
        ),
    )(stage, x, w1s, b1s, w2s, b2s)

    return out[0, :B].reshape(B, 1)


def init_discriminator_params(key, n_stages, state_dim, hidden=HIDDEN):
    """Stacked per-stage params, mimicking torch.nn.Linear uniform init."""
    k1, k2, k3, k4 = jax.random.split(key, 4)
    bound1 = 1.0 / np.sqrt(state_dim)
    bound2 = 1.0 / np.sqrt(hidden)
    w1s = jax.random.uniform(k1, (n_stages, state_dim, hidden), jnp.float32,
                             -bound1, bound1)                   # torch W1.T
    b1s = jax.random.uniform(k2, (n_stages, 1, hidden), jnp.float32,
                             -bound1, bound1)
    w2s = jax.random.uniform(k3, (n_stages, 1, hidden), jnp.float32,
                             -bound2, bound2)                   # torch W2 row
    b2s = jax.random.uniform(k4, (n_stages,), jnp.float32, -bound2, bound2)
    return (w1s, b1s, w2s, b2s)


def _reference_forward(next_s, params, stage_idx):
    w1s, b1s, w2s, b2s = params
    h = jax.nn.sigmoid(next_s @ w1s[stage_idx] + b1s[stage_idx])
    return h @ w2s[stage_idx].T + b2s[stage_idx]


# TODO(synk): training-side logic (Adam update with BCE loss, save(), and
# get_reward()'s tanh/gather reward shaping) is host/optimizer code outside
# the forward pass and is intentionally not implemented as a kernel.

if __name__ == "__main__":
    key = jax.random.PRNGKey(0)
    n_stages = 3
    batch = 8
    state_dim = 24   # np.prod(observation_space.shape) for a small synthetic env

    kp, kx = jax.random.split(key)
    params = init_discriminator_params(kp, n_stages, state_dim)
    next_s = jax.random.normal(kx, (batch, state_dim), jnp.float32)

    # All stages go through the SAME compiled executable (dynamic stage_idx).
    for stage_idx in range(n_stages):
        logits = discriminator_forward(next_s, params, jnp.int32(stage_idx))
        logits = jax.block_until_ready(logits)
        ref = _reference_forward(next_s, params, stage_idx)
        np.testing.assert_allclose(np.asarray(logits), np.asarray(ref),
                                   rtol=1e-5, atol=1e-5)
        assert logits.shape == (batch, 1)

    # Exercise the multi-tile path (grid over batch, lane-dense output,
    # ragged B with padding) on a modest batch.
    big = jax.random.normal(jax.random.PRNGKey(1), (1111, state_dim), jnp.float32)
    out_big = jax.block_until_ready(discriminator_forward(big, params, 1))
    ref_big = _reference_forward(big, params, 1)
    np.testing.assert_allclose(np.asarray(out_big), np.asarray(ref_big),
                               rtol=1e-5, atol=1e-5)
    assert out_big.shape == (1111, 1)

    print("KERNEL_OK")
</pallas_src>

<mosaic_0001>
module attributes {stable_mosaic.version = 11 : i64} {
  func.func @_disc_head_kernel(%arg0: i32, %arg1: memref<1xi32, #tpu.memory_space<smem>>, %arg2: memref<8x24xf32, #tpu.memory_space<vmem>>, %arg3: memref<1x24x32xf32, #tpu.memory_space<vmem>>, %arg4: memref<1x1x32xf32, #tpu.memory_space<vmem>>, %arg5: memref<1x1x32xf32, #tpu.memory_space<vmem>>, %arg6: memref<3xf32, #tpu.memory_space<smem>>, %arg7: memref<1x8xf32, #tpu.memory_space<vmem>>) attributes {dimension_semantics = [#tpu.dimension_semantics<parallel>], iteration_bounds = array<i64: 1>, scalar_prefetch = 1 : i64, scratch_operands = 0 : i64, tpu.core_type = #tpu.core_type<tc>, window_params = [{transform_indices = @transform_0, window_bounds = array<i64: 8, 24>}, {transform_indices = @transform_1, window_bounds = array<i64: 1, 24, 32>}, {transform_indices = @transform_2, window_bounds = array<i64: 1, 1, 32>}, {transform_indices = @transform_3, window_bounds = array<i64: 1, 1, 32>}, {transform_indices = @transform_4, window_bounds = array<i64: 3>}, {transform_indices = @transform_5, window_bounds = array<i64: 1, 8>}]} {
    %c0 = arith.constant 0 : index
    %c0_0 = arith.constant 0 : index
    %c0_1 = arith.constant 0 : index
    %0 = vector.load %arg3[%c0, %c0_0, %c0_1] : memref<1x24x32xf32, #tpu.memory_space<vmem>>, vector<1x24x32xf32>
    %1 = vector.shape_cast %0 : vector<1x24x32xf32> to vector<24x32xf32>
    %c0_2 = arith.constant 0 : index
    %c0_3 = arith.constant 0 : index
    %c0_4 = arith.constant 0 : index
    %2 = vector.load %arg4[%c0_2, %c0_3, %c0_4] : memref<1x1x32xf32, #tpu.memory_space<vmem>>, vector<1x1x32xf32>
    %3 = vector.shape_cast %2 : vector<1x1x32xf32> to vector<1x32xf32>
    %c0_5 = arith.constant 0 : index
    %c0_6 = arith.constant 0 : index
    %c0_7 = arith.constant 0 : index
    %4 = vector.load %arg5[%c0_5, %c0_6, %c0_7] : memref<1x1x32xf32, #tpu.memory_space<vmem>>, vector<1x1x32xf32>
    %5 = vector.shape_cast %4 : vector<1x1x32xf32> to vector<1x32xf32>
    %c0_8 = arith.constant 0 : index
    %6 = memref.load %arg1[%c0_8] : memref<1xi32, #tpu.memory_space<smem>>
    %7 = arith.index_cast %6 : i32 to index
    %8 = memref.load %arg6[%7] : memref<3xf32, #tpu.memory_space<smem>>
    %c0_9 = arith.constant 0 : index
    %c0_10 = arith.constant 0 : index
    %9 = vector.load %arg2[%c0_9, %c0_10] : memref<8x24xf32, #tpu.memory_space<vmem>>, vector<8x24xf32>
    %cst = arith.constant dense<0.000000e+00> : vector<8x32xf32>
    %10 = tpu.matmul %9, %1, %cst {dimension_numbers = #tpu.dot_dimension_numbers<[1], [0], [0], [1], [0, 0, 1, 1], [], []>} : vector<8x24xf32>, vector<24x32xf32>, vector<8x32xf32> -> vector<8x32xf32>
    %11 = vector.broadcast %3 : vector<1x32xf32> to vector<8x32xf32>
    %12 = arith.addf %10, %11 : vector<8x32xf32>
    %13 = arith.negf %12 : vector<8x32xf32>
    %14 = math.exp %13 : vector<8x32xf32>
    %cst_11 = arith.constant 1.000000e+00 : f32
    %15 = vector.broadcast %cst_11 : f32 to vector<8x32xf32>
    %16 = arith.addf %15, %14 : vector<8x32xf32>
    %17 = arith.divf %15, %16 : vector<8x32xf32>
    %18 = vector.broadcast %5 : vector<1x32xf32> to vector<8x32xf32>
    %19 = arith.mulf %17, %18 : vector<8x32xf32>
    %cst_12 = arith.constant dense<0.000000e+00> : vector<8xf32>
    %20 = vector.multi_reduction <add>, %19, %cst_12 [1] : vector<8x32xf32> to vector<8xf32>
    %21 = vector.broadcast %8 : f32 to vector<8xf32>
    %22 = arith.addf %20, %21 : vector<8xf32>
    %c0_13 = arith.constant 0 : index
    %c0_14 = arith.constant 0 : index
    %23 = vector.load %arg7[%c0_13, %c0_14] : memref<1x8xf32, #tpu.memory_space<vmem>>, vector<1x8xf32>
    %24 = vector.shape_cast %23 : vector<1x8xf32> to vector<8xf32>
    %25 = vector.shape_cast %22 : vector<8xf32> to vector<1x8xf32>
    tpu.vector_store %arg7[%c0_13, %c0_14], %25 {strides = array<i32>} : memref<1x8xf32, #tpu.memory_space<vmem>>, vector<1x8xf32>,
    return
  }
  func.func @transform_0(%arg0: i32, %arg1: memref<1xi32, #tpu.memory_space<smem>>) -> (i32, i32) {
    %c0_i32 = arith.constant 0 : i32
    %c0_i32_0 = arith.constant 0 : i32
    return %arg0, %c0_i32 : i32, i32
  }
  func.func @transform_1(%arg0: i32, %arg1: memref<1xi32, #tpu.memory_space<smem>>) -> (i32, i32, i32) {
    %c0 = arith.constant 0 : index
    %0 = memref.load %arg1[%c0] : memref<1xi32, #tpu.memory_space<smem>>
    %c0_i32 = arith.constant 0 : i32
    %c0_i32_0 = arith.constant 0 : i32
    %c0_i32_1 = arith.constant 0 : i32
    return %0, %c0_i32, %c0_i32_0 : i32, i32, i32
  }
  func.func @transform_2(%arg0: i32, %arg1: memref<1xi32, #tpu.memory_space<smem>>) -> (i32, i32, i32) {
    %c0 = arith.constant 0 : index
    %0 = memref.load %arg1[%c0] : memref<1xi32, #tpu.memory_space<smem>>
    %c0_i32 = arith.constant 0 : i32
    %c0_i32_0 = arith.constant 0 : i32
    %c0_i32_1 = arith.constant 0 : i32
    return %0, %c0_i32, %c0_i32_0 : i32, i32, i32
  }
  func.func @transform_3(%arg0: i32, %arg1: memref<1xi32, #tpu.memory_space<smem>>) -> (i32, i32, i32) {
    %c0 = arith.constant 0 : index
    %0 = memref.load %arg1[%c0] : memref<1xi32, #tpu.memory_space<smem>>
    %c0_i32 = arith.constant 0 : i32
    %c0_i32_0 = arith.constant 0 : i32
    %c0_i32_1 = arith.constant 0 : i32
    return %0, %c0_i32, %c0_i32_0 : i32, i32, i32
  }
  func.func @transform_4(%arg0: i32, %arg1: memref<1xi32, #tpu.memory_space<smem>>) -> i32 {
    %c0_i32 = arith.constant 0 : i32
    %c0_i32_0 = arith.constant 0 : i32
    return %c0_i32 : i32
  }
  func.func @transform_5(%arg0: i32, %arg1: memref<1xi32, #tpu.memory_space<smem>>) -> (i32, i32) {
    %c0_i32 = arith.constant 0 : i32
    %c0_i32_0 = arith.constant 0 : i32
    return %c0_i32, %arg0 : i32, i32
  }
}

</mosaic_0001>

<bundles_post_ra>
// kernel: discriminator_forward.1
= control target key start
LH: loop header
LB: loop body
LE: loop exit
PB: predicated region body
PF: predicated region fallthrough
CT: control target
= control target key end

     0   :  { %12 = vsyncpa [#allocation5], 0  ;;  %s410_s0 = inlined_call_operand.<no memory space> [shape: s32[1], index: 0, kind: input, shape index: {}]   ;;  %s411_s1 = inlined_call_operand.vmem [shape: f32[8,24], index: 1, kind: input, shape index: {}]   ;;  %s412_s2 = inlined_call_operand.hbm [shape: f32[3,24,32], index: 2, kind: input, shape index: {}]   ;;  %s413_s3 = inlined_call_operand.vmem [shape: f32[3,1,32], index: 3, kind: input, shape index: {}]   ;;  %s414_s4 = inlined_call_operand.vmem [shape: f32[3,1,32], index: 4, kind: input, shape index: {}]   ;;  %s415_s5 = inlined_call_operand.vmem [shape: f32[3], index: 5, kind: input, shape index: {}]   ;;  %s416_s6 = inlined_call_operand.hbm [shape: f32[1,8], index: 6, kind: output, shape index: {}]  }
   0x1   :  { %13 = vsyncpa [#allocation7], 0 }
   0x2   :  { %14 = vsyncpa [#allocation6], 0  ;;  %s245_s23 = smul.u32 384, %s410_s0  ;;  %s322_s24 = smov [#allocation4]  }
   0x3   :  { %s26_s25 = sshll.u32 %s322_s24, 4  ;;  %s53_s7 = sshll.u32 %s415_s5, 4  ;;  %s27_s25 = int_to_ptr.vmem [resolvable:$true] %s26_s25  ;;  %s54_s7 = int_to_ptr.vmem [resolvable:$true] %s53_s7 }
   0x4   :  { %s25_s28 = scalar_lea.hbm %s412_s2, %s245_s23  ;;  %s260_s11 = scalar_lea.hbm %s412_s2, 1152 }
   0x5   :  { %s258_s8 = scalar_lea.hbm %s25_s28, 384  ;;  %p261_p1 = scmp.lt.u32.totalorder %s25_s28, %s412_s2 }
   0x6   :  { %p259_p0 = scmp.ne.s32.totalorder %s25_s28, %s258_s8  ;;  %p262_p2 = scmp.lt.u32.totalorder %s260_s11, %s258_s8 }
   0x7   :  { %p264_p4 = scmp.lt.u32.totalorder %s258_s8, %s25_s28 }
   0x8   :  { %p263_p3 = por %p262_p2, %p261_p1 }
   0xa   :  { %p265_p5 = por %p264_p4, %p263_p3 }
   0xc   :  { %p266_p6 = pnand %p265_p5, %p259_p0 }
   0xe   :  { %269 = shalt.err (!%p266_p6)
}
   0xf   :  { %s270_s14 = scalar_lea.vmem %s27_s25, 384  ;;  %p275_p8 = scmp.lt.s32.totalorder %s27_s25, %s27_s25 }
  0x10   :  { %p271_p7 = scmp.ne.s32.totalorder %s27_s25, %s270_s14  ;;  %p276_p9 = scmp.lt.s32.totalorder %s270_s14, %s270_s14 }
  0x12   :  { %p277_p10 = por %p276_p9, %p275_p8 }
  0x14   :  { %p278_p11 = pnand %p277_p10, %p271_p7 }
  0x16   :  { %281 = shalt.err (!%p278_p11)
}
  0x17   :  { %s323_s5 = smov 128   ;;  %s324_s15 = smov 8  }
  0x18   :  { %32 = dma.hbm_to_vmem [thread:$0]  %s25_s28, 384, %s27_s25, [#allocation5], %s323_s5, %s323_s5, %s324_s15  }
  0x19   :  { %s282_s16 = scalar_lea.vmem %s54_s7, 16  ;;  %p287_p13 = scmp.lt.s32.totalorder %s54_s7, %s54_s7 }
  0x1a   :  { %p283_p12 = scmp.ne.s32.totalorder %s54_s7, %s282_s16  ;;  %p288_p1 = scmp.lt.s32.totalorder %s282_s16, %s282_s16 }
  0x1c   :  { %p289_p2 = por %p288_p1, %p287_p13 }
  0x1e   :  { %p290_p3 = pnand %p289_p2, %p283_p12 }
  0x20   :  { %293 = shalt.err (!%p290_p3)
}
  0x21   :  { %s325_s2 = smov [#allocation8]  }
  0x22   :  { %56 = dma.vmem_to_smem %s54_s7, 16, %s325_s2, [#allocation7]  }
  0x23   :  { %316 = dma.done.wait [#allocation5], 384  }
  0x24   :  { %317 = vsyncadd [#allocation5], 4294966912 }
  0x25   :  { %318 = dma.done.wait [#allocation7], 16  }
  0x26   :  { %319 = vsyncadd [#allocation7], 4294967280 }
  0x27   :  { %63 = sfence }
  0x28   :  { %v83_v0 = vld [vmem:[#allocation4] sm:$0xff]  ;;  %v84_v1 = vld [vmem:[#allocation4 + $0x8] sm:$0xff]  ;;  %v326_v2 = vmov 0.0|0.0   ;;  %vm327_vm0 = vmmov 0   ;;  %v328_v4 = vmov 0.0   ;;  %v85_v5 = vld [vmem:[#allocation4 + $0x10] sm:$0xff]  ;;  %v191_v18 = vlaneseq }
  0x29   :  { %242 = vmatprep.subr.bf16.mxu0 %v326_v2  ;;  %v243_v3 = vpack.c.bf16 %v84_v1, %v83_v0  ;;  %239 = vmatprep.mubr.msk.f32.mxu0 %vm327_vm0, %v328_v4  ;;  %v90_v6 = vld [vmem:[%s411_s1] sm:$0xff]  ;;  %vm97_vm1 = vcmask 195584   ;;  %p74_p0 = scmp.lt.s32.totalorder %s410_s0, 2  ;;  %vm184_vm2 = vcmask 261120   ;;  %s89_s30 = sld [smem:[#allocation8 + %s410_s0]]  ;;  %vm198_vm3 = vcmask 57344  }
  0x2a   :  { %v192_v19 = vand.u32 127, %v191_v18  ;;  %v194_v20 = vshrl.u32 %v191_v18, 7  ;;  %s329_s7 = smov [#allocation9]  }
  0x2b   :  { %244 = vmatpush3.bf16.msra.mxu0 %v243_v3  ;;  %s75_s23 = scalar_select %p74_p0, %s410_s0, 2 }
  0x2c   :  { %237 = vmatprep.subr.mxu0 %v328_v4  ;;  %v195_v22 = vsub.s32 %v192_v19, %v194_v20  ;;  %s206_s8 = sshll.u32 %s329_s7, 4  ;;  %s207_s8 = int_to_ptr.vmem [resolvable:$true] %s206_s8 }
  0x2d   :  { %s76_s26 = scalar_lea.vmem %s413_s3, %s75_s23  ;;  %s81_s28 = scalar_lea.vmem %s414_s4, %s75_s23 }
  0x2e   :  { %v225_v7 = vld [vmem:[%s76_s26] ss:$0 sm:$0xff]  ;;  %s294_s4 = scalar_lea.vmem %s207_s8, 16  ;;  %s298_s9 = scalar_lea.vmem %s207_s8, 32 }
  0x2f   :  { %238 = vmatpush3.msra.mxu0 %v85_v5  ;;  %v228_v14 = vld [vmem:[%s81_s28] ss:$0 sm:$0xff]  ;;  %v188_v21 = vstv %s89_s30  ;;  %p295_p4 = scmp.ne.s32.totalorder %s207_s8, %s294_s4  ;;  %p299_p5 = scmp.lt.s32.totalorder %s207_s8, %s207_s8 }
  0x30   :  { %240 = vmatmul.mubr.msk.f32.vlgmr.msra.gmra.mrb[0].mxu0 %vm97_vm1, %v90_v6  ;;  %p300_p6 = scmp.lt.s32.totalorder %s298_s9, %s294_s4 }
  0x32   :  { %p301_p7 = por %p300_p6, %p299_p5 }
  0x34   :  { %p302_p8 = pnand %p301_p7, %p295_p4 }
 0x103   :  { %v167_v8 = vpop.f32.mrb[0].mxu0 }
 0x104   :  { %v168_v9 = vadd.f32 %v225_v7, %v167_v8  ;;  %v241_v10 = vpop.f32.mrb[1].mxu0 }
 0x106   :  { %v227_v11 = vmul.f32 -1.442695, %v168_v9 }
 0x108   :  { %254 = vpow2.f32 %v227_v11 }
 0x112   :  { %v255_v12 = vpop.eup %254 }
 0x113   :  { %v174_v13 = vadd.f32 1.0, %v255_v12 }
 0x115   :  { %256 = vrcp.f32 %v174_v13 }
 0x11f   :  { %v257_v15 = vpop.eup %256 }
 0x120   :  { %v183_v16 = vmul.f32 %v257_v15, %v228_v14 }
 0x122   :  { %v185_v17 = vsel %vm184_vm2, %v183_v16, 0.0 }
 0x123   :  { %186 = vadd.xlane.f32.xlu0 %v185_v17 }
 0x1b0   :  { %v187_v23 = vpop.xlane.xlu0 %186 }
 0x1b1   :  { %v189_v24 = vadd.f32 %v188_v21, %v187_v23 }
 0x1b3   :  { %v196_v25 = vrot.slane %v189_v24, %v195_v22 }
 0x1b5   :  { %199 = vst.msk [vmem:[#allocation9] sm:$0x1] %vm198_vm3, %v196_v25 }
 0x1b6   :  { %305 = shalt.err (!%p302_p8)
}
 0x1b7   :  { %s306_s11 = scalar_lea.hbm %s416_s6, 16 }
 0x1b8   :  { %p307_p9 = scmp.ne.s32.totalorder %s416_s6, %s306_s11  ;;  %p310_p10 = scmp.lt.u32.totalorder %s306_s11, %s416_s6 }
 0x1ba   :  { %p312_p11 = pnand %p310_p10, %p307_p9 }
 0x1bc   :  { %315 = shalt.err (!%p312_p11)
}
 0x1bd   :  { %209 = dma.vmem_to_hbm [thread:$0]  %s207_s8, 16, %s416_s6, [#allocation6]  }
 0x1be   :  { %320 = dma.done.wait [#allocation6], 16  }
 0x1bf   :  { %321 = vsyncadd [#allocation6], 4294967280 }
 0x1c0   :  { %213 = vsyncpa [#allocation5], 1 }
 0x1c1   :  { %214 = vsyncpa [#allocation6], 1 }
 0x1c2   :  { %215 = vsyncpa [#allocation7], 1 }

</bundles_post_ra>
